<compile_context>
chip_gen: v5e
topology: v5e:2x2
jax: 0.10.0
libtpu: 0.0.40
codegen_flags: <defaults>
</compile_context>

<pallas_src>
import functools

import jax
import jax.numpy as jnp
import numpy as np
from jax.experimental import pallas as pl
from jax.experimental.pallas import tpu as pltpu


def _ntd_loss_kernel(local_ref, global_ref, tgt_ref, out_ref, *,
                     tau, beta, n_rows, tile_cols, steps_per_core):
    c = pl.program_id(0)          # partial-sum index (parallel axis)
    i = pl.program_id(1)          # batch-tile index within this partial (reduction axis)

    @pl.when(i == 0)
    def _():
        out_ref[...] = jnp.zeros_like(out_ref)

    C, TB = local_ref.shape                                    # (classes, batch tile)
    local = local_ref[...].astype(jnp.float32)                 # (C, TB)
    glob = global_ref[...].astype(jnp.float32)                 # (C, TB)
    tgt = tgt_ref[...]                                         # (1, TB) int32

    cls = jax.lax.broadcasted_iota(jnp.int32, (C, TB), 0)
    true_mask = cls == tgt                                     # one-hot of target per column

    # Columns past the real batch (padding up to a multiple of tile_cols) are zeroed.
    col = (jax.lax.broadcasted_iota(jnp.int32, (1, TB), 1)
           + (c * steps_per_core + i) * tile_cols)
    valid = (col < n_rows).astype(jnp.float32)                 # (1, TB)

    # ---- Cross-entropy: ce = logsumexp(local) - local[target], per column ----
    m = jnp.max(local, axis=0, keepdims=True)
    lse = m + jnp.log(jnp.sum(jnp.exp(local - m), axis=0, keepdims=True))
    true_logit = jnp.sum(jnp.where(true_mask, local, 0.0), axis=0, keepdims=True)
    ce_col = lse - true_logit                                  # (1, TB)

    # ---- Not-true distillation KL (softmax over not-true classes only) ----
    inv_tau = jnp.float32(1.0 / tau)
    neg = jnp.float32(-1e30)
    x = jnp.where(true_mask, neg, local * inv_tau)             # mask BEFORE exp
    g = jnp.where(true_mask, neg, glob * inv_tau)
    x_m = jnp.max(x, axis=0, keepdims=True)
    g_m = jnp.max(g, axis=0, keepdims=True)
    e_x = jnp.exp(x - x_m)                                     # true class -> exactly 0
    e_g = jnp.exp(g - g_m)                                     # true class -> exactly 0
    s_x = jnp.sum(e_x, axis=0, keepdims=True)
    s_g = jnp.sum(e_g, axis=0, keepdims=True)
    x_lse = x_m + jnp.log(s_x)
    g_lse = g_m + jnp.log(s_g)
    # Teacher probs reuse e_g; reciprocal goes to the otherwise-idle EUP slot.
    p_g = e_g * pl.reciprocal(s_g, approx=True)
    # sum_nt q*(logq - logp) = sum_nt q*(g - x) + (x_lse - g_lse), since sum_nt q = 1.
    # p_g is exactly 0 at the true class, so (glob - local)/tau needs no masking.
    diff = (glob - local) * inv_tau
    cross = jnp.sum(p_g * diff, axis=0, keepdims=True)
    kl_col = cross + (x_lse - g_lse)                           # (1, TB)

    partial = jnp.sum((ce_col + jnp.float32(beta * tau * tau) * kl_col) * valid)
    out_ref[...] += partial                                    # broadcast into (8,128) block


def _round_up(x, m):
    return ((x + m - 1) // m) * m


def _vmem_capacity_bytes():
    try:
        cap = int(pltpu.get_tpu_info().vmem_capacity_bytes)
        if cap > 0:
            return cap
    except Exception:
        pass
    return 64 * 1024 * 1024      # v7x per-core VMEM: safe lower bound for any generation


def _per_column_vmem_bytes(C, in_itemsize):
    """Estimated VMEM bytes per batch column of a (C, tile_cols) grid step."""
    pack = max(1, 4 // max(1, in_itemsize))     # sub-32-bit dtypes pack along sublanes
    c_in = _round_up(C, 8 * pack)               # sublane-padded input block height
    c_f32 = _round_up(C, 8)                     # sublane-padded f32 temporaries
    return (2 * 2 * c_in * in_itemsize          # local + global blocks, double-buffered
            + 2 * 4                             # int32 target row, double-buffered
            + 12 * c_f32 * 4                    # ~12 live (C, tile) f32/i32 temporaries
            + 20 * 4)                           # (1, tile) keepdims scalars (pad to 128 lanes)


def ntd_loss(local_logits, targets, global_logits, *, num_classes=10,
             tau=3.0, beta=1.0, tile_cols=None):
    B, C = local_logits.shape
    assert C == num_classes
    assert global_logits.shape == (B, C)

    in_itemsize = jnp.dtype(local_logits.dtype).itemsize
    per_col = _per_column_vmem_bytes(C, in_itemsize)
    vmem_cap = _vmem_capacity_bytes()

    # TODO(synk): for very large num_classes the full class dim may not fit VMEM even at
    # 128 lanes; that would need class-dim tiling (two-pass logsumexp), not implemented.
    if tile_cols is None:
        budget = min(40 * 1024 * 1024, vmem_cap // 2)   # leave >=half of VMEM headroom (v7x!)
        tile_cols = min(budget // max(1, per_col),
                        32 * 1024,                      # >=~2.5 MiB real input bytes/step @C=10
                        _round_up(B, 128))
    tile_cols = max(128, (int(tile_cols) // 128) * 128)
    vmem_limit = int(min(max(2 * tile_cols * per_col, 32 * 1024 * 1024),
                         (vmem_cap * 3) // 4))

    n_tiles = -(-B // tile_cols)
    num_partials = 2 if n_tiles >= 2 else 1
    steps_per_core = -(-n_tiles // num_partials)
    B_pad = num_partials * steps_per_core * tile_cols

    # Batch-on-lanes layout: (C, B) so the 128-lane axis carries the batch.
    local_t = jnp.transpose(local_logits)               # (C, B)
    global_t = jnp.transpose(global_logits)             # (C, B)
    tgt = targets.astype(jnp.int32).reshape(1, B)
    if B_pad != B:
        pad = B_pad - B
        local_t = jnp.pad(local_t, ((0, 0), (0, pad)))
        global_t = jnp.pad(global_t, ((0, 0), (0, pad)))
        tgt = jnp.pad(tgt, ((0, 0), (0, pad)))

    kernel = functools.partial(_ntd_loss_kernel, tau=float(tau), beta=float(beta),
                               n_rows=B, tile_cols=tile_cols,
                               steps_per_core=steps_per_core)

    # TODO(synk): on v7x, use pltpu.CORE_PARALLEL for the leading axis to explicitly pin
    # the two partial sums onto the two TensorCores.
    out = pl.pallas_call(
        kernel,
        out_shape=jax.ShapeDtypeStruct((num_partials * 8, 128), jnp.float32),
        grid_spec=pltpu.PrefetchScalarGridSpec(
            num_scalar_prefetch=0,
            grid=(num_partials, steps_per_core),
            in_specs=[
                pl.BlockSpec((C, tile_cols), lambda c, i: (0, c * steps_per_core + i)),
                pl.BlockSpec((C, tile_cols), lambda c, i: (0, c * steps_per_core + i)),
                pl.BlockSpec((1, tile_cols), lambda c, i: (0, c * steps_per_core + i)),
            ],
            out_specs=pl.BlockSpec((8, 128), lambda c, i: (c, 0)),
        ),
        compiler_params=pltpu.CompilerParams(
            dimension_semantics=("parallel", "arbitrary"),
            vmem_limit_bytes=vmem_limit,
        ),
    )(local_t, global_t, tgt)

    # Every element of a partial's (8,128) block holds that partial's sum; combine + 1/B.
    partials = out.reshape(num_partials, 8, 128)[:, 0, 0]
    return jnp.sum(partials) / jnp.float32(B)


def _ntd_loss_ref_numpy(local_logits, targets, global_logits, num_classes=10,
                        tau=3.0, beta=1.0):
    """Independent numpy reference mirroring the PyTorch module."""
    local = np.asarray(local_logits, np.float64)
    glob = np.asarray(global_logits, np.float64)
    tgt = np.asarray(targets)
    B = local.shape[0]

    def log_softmax(z):
        z = z - z.max(axis=1, keepdims=True)
        return z - np.log(np.exp(z).sum(axis=1, keepdims=True))

    ce = -np.mean(log_softmax(local)[np.arange(B), tgt])

    keep = np.arange(num_classes)[None, :] != tgt[:, None]
    local_nt = local[keep].reshape(B, num_classes - 1)
    glob_nt = glob[keep].reshape(B, num_classes - 1)

    lp = log_softmax(local_nt / tau)
    gq = np.exp(log_softmax(glob_nt / tau))
    kl = np.sum(gq * (np.log(gq) - lp)) / B          # KLDivLoss(reduction='batchmean')
    return np.float32(ce + beta * tau * tau * kl)


if __name__ == "__main__":
    key = jax.random.PRNGKey(0)
    k1, k2, k3, k4, k5, k6 = jax.random.split(key, 6)

    # Tolerances: kernel is f32 and uses the EUP approximate reciprocal for the teacher
    # normalization (~2^-12 relative), compared against a float64 reference.
    RTOL, ATOL = 2e-3, 1e-5

    # Case 1: module-default classifier shape (single tile, single partial).
    B, C = 8, 10
    local_logits = jax.random.normal(k1, (B, C), dtype=jnp.float32)
    global_logits = jax.random.normal(k2, (B, C), dtype=jnp.float32)
    targets = jax.random.randint(k3, (B,), 0, C, dtype=jnp.int32)

    loss = jax.block_until_ready(
        ntd_loss(local_logits, targets, global_logits, num_classes=C, tau=3.0, beta=1.0))
    ref = _ntd_loss_ref_numpy(local_logits, targets, global_logits, num_classes=C,
                              tau=3.0, beta=1.0)
    np.testing.assert_allclose(np.asarray(loss), ref, rtol=RTOL, atol=ATOL)

    # Case 2: non-multiple batch with a forced small tile -> exercises padded-column
    # masking, the 2-way "parallel" partial axis and the multi-step accumulator.
    B2, C2 = 300, 10
    local2 = jax.random.normal(k4, (B2, C2), dtype=jnp.float32)
    global2 = jax.random.normal(k5, (B2, C2), dtype=jnp.float32)
    targets2 = jax.random.randint(k6, (B2,), 0, C2, dtype=jnp.int32)

    loss2 = jax.block_until_ready(
        ntd_loss(local2, targets2, global2, num_classes=C2, tau=3.0, beta=1.0,
                 tile_cols=128))
    ref2 = _ntd_loss_ref_numpy(local2, targets2, global2, num_classes=C2,
                               tau=3.0, beta=1.0)
    np.testing.assert_allclose(np.asarray(loss2), ref2, rtol=RTOL, atol=ATOL)

    # Case 3: bf16 inputs (half the HBM traffic; v5e-relevant), f32 math in-kernel.
    local2_bf = local2.astype(jnp.bfloat16)
    global2_bf = global2.astype(jnp.bfloat16)
    loss3 = jax.block_until_ready(
        ntd_loss(local2_bf, targets2, global2_bf, num_classes=C2, tau=3.0, beta=1.0))
    ref3 = _ntd_loss_ref_numpy(np.asarray(local2_bf, np.float32), targets2,
                               np.asarray(global2_bf, np.float32), num_classes=C2,
                               tau=3.0, beta=1.0)
    np.testing.assert_allclose(np.asarray(loss3), ref3, rtol=RTOL, atol=1e-4)

    print("KERNEL_OK")
</pallas_src>

<mosaic_0001>
module attributes {stable_mosaic.version = 11 : i64} {
  func.func @_ntd_loss_kernel(%arg0: i32, %arg1: i32, %arg2: memref<10x128xf32, #tpu.memory_space<vmem>>, %arg3: memref<10x128xf32, #tpu.memory_space<vmem>>, %arg4: memref<1x128xi32, #tpu.memory_space<vmem>>, %arg5: memref<8x128xf32, #tpu.memory_space<vmem>>) attributes {dimension_semantics = [#tpu.dimension_semantics<parallel>, #tpu.dimension_semantics<arbitrary>], iteration_bounds = array<i64: 1, 1>, scalar_prefetch = 0 : i64, scratch_operands = 0 : i64, tpu.core_type = #tpu.core_type<tc>, window_params = [{transform_indices = @transform_0, window_bounds = array<i64: 10, 128>}, {transform_indices = @transform_1, window_bounds = array<i64: 10, 128>}, {transform_indices = @transform_2, window_bounds = array<i64: 1, 128>}, {transform_indices = @transform_3, window_bounds = array<i64: 8, 128>}]} {
    %c0_i32 = arith.constant 0 : i32
    %0 = arith.cmpi eq, %arg1, %c0_i32 : i32
    %1 = arith.extui %0 : i1 to i32
    %c0_i32_0 = arith.constant 0 : i32
    %2 = arith.cmpi ne, %1, %c0_i32_0 : i32
    scf.if %2 {
      %cst_25 = arith.constant 0.000000e+00 : f32
      %82 = vector.broadcast %cst_25 : f32 to vector<8x128xf32>
      %c0_26 = arith.constant 0 : index
      %c0_27 = arith.constant 0 : index
      %83 = vector.load %arg5[%c0_26, %c0_27] : memref<8x128xf32, #tpu.memory_space<vmem>>, vector<8x128xf32>
      tpu.vector_store %arg5[%c0_26, %c0_27], %82 {strides = array<i32>} : memref<8x128xf32, #tpu.memory_space<vmem>>, vector<8x128xf32>,
    } else {
    }
    %c0 = arith.constant 0 : index
    %c0_1 = arith.constant 0 : index
    %3 = vector.load %arg2[%c0, %c0_1] : memref<10x128xf32, #tpu.memory_space<vmem>>, vector<10x128xf32>
    %c0_2 = arith.constant 0 : index
    %c0_3 = arith.constant 0 : index
    %4 = vector.load %arg3[%c0_2, %c0_3] : memref<10x128xf32, #tpu.memory_space<vmem>>, vector<10x128xf32>
    %c0_4 = arith.constant 0 : index
    %c0_5 = arith.constant 0 : index
    %5 = vector.load %arg4[%c0_4, %c0_5] : memref<1x128xi32, #tpu.memory_space<vmem>>, vector<1x128xi32>
    %6 = tpu.iota {dimensions = array<i32: 0>} : vector<10x128xi32>
    %7 = vector.broadcast %5 : vector<1x128xi32> to vector<10x128xi32>
    %8 = arith.cmpi eq, %6, %7 : vector<10x128xi32>
    %9 = tpu.iota {dimensions = array<i32: 1>} : vector<1x128xi32>
    %c1_i32 = arith.constant 1 : i32
    %10 = arith.muli %arg0, %c1_i32 : i32
    %11 = arith.addi %10, %arg1 : i32
    %c128_i32 = arith.constant 128 : i32
    %12 = arith.muli %11, %c128_i32 : i32
    %13 = vector.broadcast %12 : i32 to vector<1x128xi32>
    %14 = arith.addi %9, %13 : vector<1x128xi32>
    %c8_i32 = arith.constant 8 : i32
    %15 = vector.broadcast %c8_i32 : i32 to vector<1x128xi32>
    %16 = arith.cmpi slt, %14, %15 : vector<1x128xi32>
    %17 = arith.extui %16 : vector<1x128xi1> to vector<1x128xi32>
    %18 = arith.sitofp %17 : vector<1x128xi32> to vector<1x128xf32>
    %cst = arith.constant dense<0xFF800000> : vector<128xf32>
    %19 = vector.multi_reduction <maximumf>, %3, %cst [0] : vector<10x128xf32> to vector<128xf32>
    %20 = vector.shape_cast %19 : vector<128xf32> to vector<1x128xf32>
    %21 = vector.broadcast %20 : vector<1x128xf32> to vector<10x128xf32>
    %22 = arith.subf %3, %21 : vector<10x128xf32>
    %23 = math.exp %22 : vector<10x128xf32>
    %cst_6 = arith.constant dense<0.000000e+00> : vector<128xf32>
    %24 = vector.multi_reduction <add>, %23, %cst_6 [0] : vector<10x128xf32> to vector<128xf32>
    %25 = vector.shape_cast %24 : vector<128xf32> to vector<1x128xf32>
    %26 = math.log %25 : vector<1x128xf32>
    %27 = arith.addf %20, %26 : vector<1x128xf32>
    %cst_7 = arith.constant 0.000000e+00 : f32
    %28 = vector.broadcast %cst_7 : f32 to vector<10x128xf32>
    %29 = arith.select %8, %3, %28 : vector<10x128xi1>, vector<10x128xf32>
    %cst_8 = arith.constant dense<0.000000e+00> : vector<128xf32>
    %30 = vector.multi_reduction <add>, %29, %cst_8 [0] : vector<10x128xf32> to vector<128xf32>
    %31 = vector.shape_cast %30 : vector<128xf32> to vector<1x128xf32>
    %32 = arith.subf %27, %31 : vector<1x128xf32>
    %cst_9 = arith.constant 0.333333343 : f32
    %33 = vector.broadcast %cst_9 : f32 to vector<10x128xf32>
    %34 = arith.mulf %3, %33 : vector<10x128xf32>
    %cst_10 = arith.constant -1.000000e+30 : f32
    %35 = vector.broadcast %cst_10 : f32 to vector<10x128xf32>
    %36 = arith.select %8, %35, %34 : vector<10x128xi1>, vector<10x128xf32>
    %cst_11 = arith.constant 0.333333343 : f32
    %37 = vector.broadcast %cst_11 : f32 to vector<10x128xf32>
    %38 = arith.mulf %4, %37 : vector<10x128xf32>
    %cst_12 = arith.constant -1.000000e+30 : f32
    %39 = vector.broadcast %cst_12 : f32 to vector<10x128xf32>
    %40 = arith.select %8, %39, %38 : vector<10x128xi1>, vector<10x128xf32>
    %cst_13 = arith.constant dense<0xFF800000> : vector<128xf32>
    %41 = vector.multi_reduction <maximumf>, %36, %cst_13 [0] : vector<10x128xf32> to vector<128xf32>
    %42 = vector.shape_cast %41 : vector<128xf32> to vector<1x128xf32>
    %cst_14 = arith.constant dense<0xFF800000> : vector<128xf32>
    %43 = vector.multi_reduction <maximumf>, %40, %cst_14 [0] : vector<10x128xf32> to vector<128xf32>
    %44 = vector.shape_cast %43 : vector<128xf32> to vector<1x128xf32>
    %45 = vector.broadcast %42 : vector<1x128xf32> to vector<10x128xf32>
    %46 = arith.subf %36, %45 : vector<10x128xf32>
    %47 = math.exp %46 : vector<10x128xf32>
    %48 = vector.broadcast %44 : vector<1x128xf32> to vector<10x128xf32>
    %49 = arith.subf %40, %48 : vector<10x128xf32>
    %50 = math.exp %49 : vector<10x128xf32>
    %cst_15 = arith.constant dense<0.000000e+00> : vector<128xf32>
    %51 = vector.multi_reduction <add>, %47, %cst_15 [0] : vector<10x128xf32> to vector<128xf32>
    %52 = vector.shape_cast %51 : vector<128xf32> to vector<1x128xf32>
    %cst_16 = arith.constant dense<0.000000e+00> : vector<128xf32>
    %53 = vector.multi_reduction <add>, %50, %cst_16 [0] : vector<10x128xf32> to vector<128xf32>
    %54 = vector.shape_cast %53 : vector<128xf32> to vector<1x128xf32>
    %55 = math.log %52 : vector<1x128xf32>
    %56 = arith.addf %42, %55 : vector<1x128xf32>
    %57 = math.log %54 : vector<1x128xf32>
    %58 = arith.addf %44, %57 : vector<1x128xf32>
    %59 = tpu.reciprocal %54 {approx = true} : vector<1x128xf32> -> vector<1x128xf32>
    %60 = vector.broadcast %59 : vector<1x128xf32> to vector<10x128xf32>
    %61 = arith.mulf %50, %60 : vector<10x128xf32>
    %62 = arith.subf %4, %3 : vector<10x128xf32>
    %cst_17 = arith.constant 0.333333343 : f32
    %63 = vector.broadcast %cst_17 : f32 to vector<10x128xf32>
    %64 = arith.mulf %62, %63 : vector<10x128xf32>
    %65 = arith.mulf %61, %64 : vector<10x128xf32>
    %cst_18 = arith.constant dense<0.000000e+00> : vector<128xf32>
    %66 = vector.multi_reduction <add>, %65, %cst_18 [0] : vector<10x128xf32> to vector<128xf32>
    %67 = vector.shape_cast %66 : vector<128xf32> to vector<1x128xf32>
    %68 = arith.subf %56, %58 : vector<1x128xf32>
    %69 = arith.addf %67, %68 : vector<1x128xf32>
    %cst_19 = arith.constant 9.000000e+00 : f32
    %70 = vector.broadcast %cst_19 : f32 to vector<1x128xf32>
    %71 = arith.mulf %70, %69 : vector<1x128xf32>
    %72 = arith.addf %32, %71 : vector<1x128xf32>
    %73 = arith.mulf %72, %18 : vector<1x128xf32>
    %74 = vector.shape_cast %73 : vector<1x128xf32> to vector<1x1x128xf32>
    %cst_20 = arith.constant dense<0.000000e+00> : vector<1xf32>
    %75 = vector.multi_reduction <add>, %74, %cst_20 [1, 2] : vector<1x1x128xf32> to vector<1xf32>
    %76 = vector.shape_cast %75 : vector<1xf32> to vector<1x1x1xf32>
    %77 = vector.extract %76[0, 0, 0] : f32 from vector<1x1x1xf32>
    %c0_21 = arith.constant 0 : index
    %c0_22 = arith.constant 0 : index
    %78 = vector.load %arg5[%c0_21, %c0_22] : memref<8x128xf32, #tpu.memory_space<vmem>>, vector<8x128xf32>
    %79 = vector.broadcast %77 : f32 to vector<8x128xf32>
    %80 = arith.addf %78, %79 : vector<8x128xf32>
    %c0_23 = arith.constant 0 : index
    %c0_24 = arith.constant 0 : index
    %81 = vector.load %arg5[%c0_23, %c0_24] : memref<8x128xf32, #tpu.memory_space<vmem>>, vector<8x128xf32>
    tpu.vector_store %arg5[%c0_23, %c0_24], %80 {strides = array<i32>} : memref<8x128xf32, #tpu.memory_space<vmem>>, vector<8x128xf32>,
    return
  }
  func.func @transform_0(%arg0: i32, %arg1: i32) -> (i32, i32) {
    %c1_i32 = arith.constant 1 : i32
    %0 = arith.muli %arg0, %c1_i32 : i32
    %1 = arith.addi %0, %arg1 : i32
    %c0_i32 = arith.constant 0 : i32
    %c0_i32_0 = arith.constant 0 : i32
    return %c0_i32, %1 : i32, i32
  }
  func.func @transform_1(%arg0: i32, %arg1: i32) -> (i32, i32) {
    %c1_i32 = arith.constant 1 : i32
    %0 = arith.muli %arg0, %c1_i32 : i32
    %1 = arith.addi %0, %arg1 : i32
    %c0_i32 = arith.constant 0 : i32
    %c0_i32_0 = arith.constant 0 : i32
    return %c0_i32, %1 : i32, i32
  }
  func.func @transform_2(%arg0: i32, %arg1: i32) -> (i32, i32) {
    %c1_i32 = arith.constant 1 : i32
    %0 = arith.muli %arg0, %c1_i32 : i32
    %1 = arith.addi %0, %arg1 : i32
    %c0_i32 = arith.constant 0 : i32
    %c0_i32_0 = arith.constant 0 : i32
    return %c0_i32, %1 : i32, i32
  }
  func.func @transform_3(%arg0: i32, %arg1: i32) -> (i32, i32) {
    %c0_i32 = arith.constant 0 : i32
    %c0_i32_0 = arith.constant 0 : i32
    return %arg0, %c0_i32 : i32, i32
  }
}

</mosaic_0001>

<bundles_post_ra>
// kernel: tpu_custom_call.1
= control target key start
LH: loop header
LB: loop body
LE: loop exit
PB: predicated region body
PF: predicated region fallthrough
CT: control target
= control target key end

     0   :  { %8 = vsyncpa [#allocation3], 0  ;;  %s469_s0 = inlined_call_operand.hbm [shape: f32[10,128], index: 0, kind: input, shape index: {}]   ;;  %s470_s1 = inlined_call_operand.hbm [shape: f32[10,128], index: 1, kind: input, shape index: {}]   ;;  %s471_s2 = inlined_call_operand.vmem [shape: s32[1,128], index: 2, kind: input, shape index: {}]   ;;  %s472_s3 = inlined_call_operand.hbm [shape: f32[8,128], index: 3, kind: output, shape index: {}]  }
   0x1   :  { %9 = vsyncpa [#allocation6], 0 }
   0x2   :  { %10 = vsyncpa [#allocation4], 0  ;;  %s18_s14 = sshll.u32 %s469_s0, 4  ;;  %s355_s15 = smov [#allocation2]   ;;  %s19_s14 = int_to_ptr.hbm [resolvable:$true] %s18_s14 }
   0x3   :  { %s20_s16 = sshll.u32 %s355_s15, 4  ;;  %s34_s19 = sshll.u32 %s470_s1, 4  ;;  %s21_s16 = int_to_ptr.vmem [resolvable:$true] %s20_s16  ;;  %s35_s19 = int_to_ptr.hbm [resolvable:$true] %s34_s19 }
   0x4   :  { %s356_s20 = smov 128   ;;  %s357_s21 = smov 8  }
   0x5   :  { %26 = dma.hbm_to_vmem [thread:$0]  %s19_s14, 256, %s21_s16, [#allocation3], %s356_s20, %s356_s20, %s357_s21  }
   0x6   :  { %s358_s22 = smov [#allocation5]  }
   0x7   :  { %s36_s23 = sshll.u32 %s358_s22, 4  ;;  %s37_s23 = int_to_ptr.vmem [resolvable:$true] %s36_s23 }
   0x8   :  { %42 = dma.hbm_to_vmem [thread:$0]  %s35_s19, 256, %s37_s23, [#allocation6], %s356_s20, %s356_s20, %s357_s21  }
   0x9   :  { %349 = dma.done.wait [#allocation3], 256  }
   0xa   :  { %350 = vsyncadd [#allocation3], 4294967040 }
   0xb   :  { %351 = dma.done.wait [#allocation6], 256  }
   0xc   :  { %352 = vsyncadd [#allocation6], 4294967040  ;;  %v79_v0 = vlaneseq  ;;  %v393_v3 = vld [vmem:[#allocation2] sm:$0xff]  ;;  %v395_v4 = vld [vmem:[#allocation2 + $0x8] sm:$0x3]  ;;  %vm94_vm0 = vcmask 1041408  }
   0xd   :  { %v397_v5 = vld [vmem:[#allocation5] sm:$0xff]  ;;  %v399_v6 = vld [vmem:[#allocation5 + $0x8] sm:$0x3]  ;;  %v404_v7 = vld [vmem:[%s471_s2] ss:$0 sm:$0xff]  ;;  %v95_v8 = vsel %vm94_vm0, %v395_v4, -inf }
   0xe   :  { %v388_v1 = vshrl.u32 %v79_v0, 7  ;;  %v131_v9 = vmul.f32 0.33333334, %v393_v3  ;;  %v132_v10 = vmul.f32 0.33333334, %v395_v4  ;;  %v96_v11 = vmax.f32 %v393_v3, %v95_v8  ;;  %s360_s2 = smov [#allocation7]  }
   0xf   :  { %v135_v12 = vmul.f32 0.33333334, %v397_v5  ;;  %v136_v15 = vmul.f32 0.33333334, %v399_v6  ;;  %vm211_vm4 = vcmask 1040384   ;;  %s231_s24 = sshll.u32 %s360_s2, 4  ;;  %s232_s24 = int_to_ptr.vmem [resolvable:$true] %s231_s24 }
  0x10   :  { %v391_v2 = vadd.s32 8, %v388_v1  ;;  %vm83_vm1 = vcmp.eq.s32.totalorder %v388_v1, %v404_v7  ;;  %v97_v16 = vrot.slane %v96_v11, 4  ;;  %s233_s27 = sshll.u32 %s472_s3, 4  ;;  %s234_s27 = int_to_ptr.hbm [resolvable:$true] %s233_s27 }
  0x11   :  { %v133_v13 = vsel %vm83_vm1, -1e+30, %v131_v9  ;;  %v137_v17 = vsel %vm83_vm1, -1e+30, %v135_v12 }
  0x12   :  { %vm84_vm2 = vcmp.eq.s32.totalorder %v391_v2, %v404_v7  ;;  %v98_v21 = vmax.f32 %v96_v11, %v97_v16  ;;  %v193_v2 = vsub.f32 %v399_v6, %v395_v4 }
  0x13   :  { %v134_v14 = vsel %vm84_vm2, -1e+30, %v132_v10  ;;  %v138_v19 = vsel %vm84_vm2, -1e+30, %v136_v15  ;;  %v121_v15 = vsel %vm84_vm2, %v395_v4, 0.0 }
  0x14   :  { %v139_v18 = vsel %vm94_vm0, %v134_v14, -inf  ;;  %v147_v22 = vsel %vm94_vm0, %v138_v19, -inf  ;;  %v99_v25 = vrot.slane %v98_v21, 2  ;;  %v195_v1 = vmul.f32 0.33333334, %v193_v2 }
  0x15   :  { %v140_v20 = vmax.f32 %v133_v13, %v139_v18  ;;  %v148_v24 = vmax.f32 %v137_v17, %v147_v22 }
  0x16   :  { %v100_v28 = vmax.f32 %v98_v21, %v99_v25  ;;  %v122_v21 = vsel %vm94_vm0, %v121_v15, 0.0 }
  0x17   :  { %v141_v23 = vrot.slane %v140_v20, 4  ;;  %v149_v27 = vrot.slane %v148_v24, 4 }
  0x18   :  { %v101_v31 = vrot.slane %v100_v28, 1 }
  0x19   :  { %v142_v26 = vmax.f32 %v140_v20, %v141_v23  ;;  %v150_v30 = vmax.f32 %v148_v24, %v149_v27  ;;  %v120_v20 = vsel %vm83_vm1, %v393_v3, 0.0 }
  0x1a   :  { %v431_v34 = vmax.f32 %v100_v28, %v101_v31  ;;  %v123_v25 = vadd.f32 %v122_v21, %v120_v20 }
  0x1b   :  { %v143_v29 = vrot.slane %v142_v26, 2  ;;  %v151_v33 = vrot.slane %v150_v30, 2 }
  0x1c   :  { %v103_v37 = vsub.f32 %v393_v3, %v431_v34  ;;  %v104_v38 = vsub.f32 %v395_v4, %v431_v34 }
  0x1d   :  { %v144_v32 = vmax.f32 %v142_v26, %v143_v29  ;;  %v152_v36 = vmax.f32 %v150_v30, %v151_v33  ;;  %v124_v29 = vrot.slane %v123_v25, 4  ;;  %v192_v30 = vsub.f32 %v397_v5, %v393_v3 }
  0x1e   :  { %v105_v41 = vmul.f32 1.442695, %v103_v37  ;;  %v107_v42 = vmul.f32 1.442695, %v104_v38 }
  0x1f   :  { %v145_v35 = vrot.slane %v144_v32, 1  ;;  %v153_v40 = vrot.slane %v152_v36, 1  ;;  %v125_v31 = vadd.f32 %v124_v29, %v123_v25 }
  0x20   :  { %257 = vpow2.f32 %v107_v42 }
  0x21   :  { %v437_v39 = vmax.f32 %v144_v32, %v145_v35  ;;  %v439_v43 = vmax.f32 %v152_v36, %v153_v40  ;;  %259 = vpow2.f32 %v105_v41  ;;  %v194_v32 = vmul.f32 0.33333334, %v192_v30 }
  0x22   :  { %v126_v37 = vrot.slane %v125_v31, 2 }
  0x23   :  { %v155_v44 = vsub.f32 %v133_v13, %v437_v39  ;;  %v156_v45 = vsub.f32 %v134_v14, %v437_v39  ;;  %v161_v48 = vsub.f32 %v137_v17, %v439_v43  ;;  %v162_v49 = vsub.f32 %v138_v19, %v439_v43 }
  0x25   :  { %v157_v46 = vmul.f32 1.442695, %v155_v44  ;;  %v159_v47 = vmul.f32 1.442695, %v156_v45  ;;  %v163_v50 = vmul.f32 1.442695, %v161_v48  ;;  %v127_v44 = vadd.f32 %v126_v37, %v125_v31 }
  0x26   :  { %v165_v51 = vmul.f32 1.442695, %v162_v49  ;;  %v258_v52 = vpop.eup %257 }
  0x27   :  { %261 = vpow2.f32 %v157_v46  ;;  %v260_v53 = vpop.eup %259  ;;  %v109_v54 = vsel %vm94_vm0, %v258_v52, 0.0  ;;  %v128_v48 = vrot.slane %v127_v44, 1 }
  0x28   :  { %263 = vpow2.f32 %v159_v47  ;;  %v110_v57 = vadd.f32 %v260_v53, %v109_v54  ;;  %v86_v54 = vand.u32 127, %v79_v0 }
  0x29   :  { %265 = vpow2.f32 %v163_v50 }
  0x2a   :  { %267 = vpow2.f32 %v165_v51  ;;  %v111_v8 = vrot.slane %v110_v57, 4  ;;  %vm91_vm3 = vcmp.lt.s32.totalorder %v86_v54, 8 }
  0x2c   :  { %v112_v13 = vadd.f32 %v111_v8, %v110_v57 }
  0x2d   :  { %v262_v55 = vpop.eup %261 }
  0x2e   :  { %v264_v56 = vpop.eup %263  ;;  %v113_v18 = vrot.slane %v112_v13, 2 }
  0x2f   :  { %v167_v58 = vsel %vm94_vm0, %v264_v56, 0.0  ;;  %v266_v59 = vpop.eup %265  ;;  %v129_v56 = vadd.f32 %v128_v48, %v127_v44 }
  0x30   :  { %v168_v60 = vadd.f32 %v262_v55, %v167_v58  ;;  %v268_v61 = vpop.eup %267  ;;  %v114_v24 = vadd.f32 %v113_v18, %v112_v13 }
  0x31   :  { %v175_v63 = vsel %vm94_vm0, %v268_v61, 0.0 }
  0x32   :  { %v169_v62 = vrot.slane %v168_v60, 4  ;;  %v176_v9 = vadd.f32 %v266_v59, %v175_v63  ;;  %v115_v28 = vrot.slane %v114_v24, 1  ;;  %v359_v63 = vmov 0.0  }
  0x33   :  { %v247_v8 = vsel %vm91_vm3, 1.0, %v359_v63 }
  0x34   :  { %v170_v10 = vadd.f32 %v169_v62, %v168_v60  ;;  %v177_v11 = vrot.slane %v176_v9, 4  ;;  %v116_v7 = vadd.f32 %v115_v28, %v114_v24 }
  0x36   :  { %v171_v12 = vrot.slane %v170_v10, 2  ;;  %v178_v14 = vadd.f32 %v177_v11, %v176_v9 }
  0x38   :  { %v179_v16 = vrot.slane %v178_v14, 2  ;;  %v172_v17 = vadd.f32 %v171_v12, %v170_v10 }
  0x3a   :  { %v180_v19 = vadd.f32 %v179_v16, %v178_v14  ;;  %v173_v23 = vrot.slane %v172_v17, 1 }
  0x3c   :  { %v181_v22 = vrot.slane %v180_v19, 1  ;;  %v174_v27 = vadd.f32 %v173_v23, %v172_v17 }
  0x3e   :  { %v182_v26 = vadd.f32 %v181_v22, %v180_v19 }
  0x40   :  { %269 = vrcp.f32 %v182_v26 }
  0x41   :  { %271 = vlog2.f32 %v174_v27 }
  0x42   :  { %273 = vlog2.f32 %v182_v26 }
  0x43   :  { %275 = vlog2.f32 %v116_v7 }
  0x46   :  { %v270_v33 = vpop.eup %269 }
  0x47   :  { %v190_v35 = vmul.f32 %v270_v33, %v266_v59  ;;  %v191_v36 = vmul.f32 %v270_v33, %v268_v61  ;;  %v272_v41 = vpop.eup %271 }
  0x48   :  { %v274_v4 = vpop.eup %273  ;;  %v184_v3 = vmul.f32 0.6931472, %v272_v41 }
  0x49   :  { %v196_v38 = vmul.f32 %v194_v32, %v190_v35  ;;  %v197_v40 = vmul.f32 %v195_v1, %v191_v36  ;;  %v187_v5 = vmul.f32 0.6931472, %v274_v4  ;;  %v276_v46 = vpop.eup %275 }
  0x4a   :  { %v118_v49 = vmul.f32 0.6931472, %v276_v46  ;;  %v185_v50 = vadd.f32 %v184_v3, %v437_v39 }
  0x4b   :  { %v198_v6 = vsel %vm94_vm0, %v197_v40, 0.0  ;;  %v188_v51 = vadd.f32 %v187_v5, %v439_v43 }
  0x4c   :  { %v199_v42 = vadd.f32 %v198_v6, %v196_v38  ;;  %v119_v55 = vadd.f32 %v118_v49, %v431_v34 }
  0x4d   :  { %v206_v58 = vsub.f32 %v185_v50, %v188_v51 }
  0x4e   :  { %v200_v45 = vrot.slane %v199_v42, 4  ;;  %v130_v60 = vsub.f32 %v119_v55, %v129_v56 }
  0x50   :  { %v201_v47 = vadd.f32 %v200_v45, %v199_v42 }
  0x52   :  { %v202_v52 = vrot.slane %v201_v47, 2 }
  0x54   :  { %v203_v53 = vadd.f32 %v202_v52, %v201_v47 }
  0x56   :  { %v204_v57 = vrot.slane %v203_v53, 1 }
  0x58   :  { %v205_v59 = vadd.f32 %v204_v57, %v203_v53 }
  0x5a   :  { %v207_v61 = vadd.f32 %v206_v58, %v205_v59 }
  0x5c   :  { %v208_v62 = vmul.f32 9.0, %v207_v61 }
  0x5e   :  { %v209_v9 = vadd.f32 %v208_v62, %v130_v60 }
  0x60   :  { %v210_v39 = vmul.f32 %v247_v8, %v209_v9 }
  0x62   :  { %v212_v43 = vsel %vm211_vm4, %v210_v39, 0.0 }
  0x63   :  { %213 = vadd.xlane.f32.xlu0 %v212_v43 }
  0xd6   :  { %v214_v10 = vpop.xlane.xlu0 %213 }
  0xd7   :  { %v215_v11 = vrot.slane %v214_v10, 4 }
  0xd9   :  { %v216_v0 = vadd.f32 %v215_v11, %v214_v10 }
  0xdb   :  { %v217_v12 = vrot.slane %v216_v0, 2 }
  0xdd   :  { %v218_v34 = vadd.f32 %v217_v12, %v216_v0 }
  0xdf   :  { %v219_v13 = vrot.slane %v218_v34, 1 }
  0xe1   :  { %v220_v14 = vadd.f32 %v219_v13, %v218_v34 }
  0xe3   :  { %248 = vpush %v220_v14 }
 0x114   :  { %s249_s28 = spop %248 }
 0x115   :  { %v223_v15 = vstv %s249_s28 }
 0x116   :  { %225 = vst [vmem:[#allocation7] sm:$0xff] %v223_v15 }
 0x117   :  { %236 = dma.vmem_to_hbm [thread:$0]  %s232_s24, 128, %s234_s27, [#allocation4]  }
 0x118   :  { %353 = dma.done.wait [#allocation4], 128  }
 0x119   :  { %354 = vsyncadd [#allocation4], 4294967168 }
 0x11a   :  { %241 = vsyncpa [#allocation3], 1 }
 0x11b   :  { %242 = vsyncpa [#allocation6], 1 }
 0x11c   :  { %243 = vsyncpa [#allocation4], 1 }

</bundles_post_ra>
